<compile_context>
chip_gen: v7x
topology: tpu7x:2x2x1
jax: 0.10.0
libtpu: 0.0.40
codegen_flags: <defaults>
</compile_context>

<pallas_src>
import functools

import jax
import jax.numpy as jnp
from jax.experimental import pallas as pl
from jax.experimental.pallas import tpu as pltpu

LANE = 128
SUBLANE = 8
_TILE = SUBLANE * LANE           # 1024: minimal host-side pad unit (keeps rows % 8 == 0)
_MAX_BLOCK_ROWS = 2048           # 2048 x 128 x 4B = 1 MiB per f32 operand block
_VMEM_LIMIT = 32 * 1024 * 1024   # headroom for big-block temps; <= v6e/v7x default, raises v5e's 16 MiB


def _focal_terms(x, t, alpha, gamma):
    # Numerically stable: log_sigmoid(x) = -softplus(-x).  Reuse the log-probs
    # inside the focal powers: p**g = exp(g*log_p), (1-p)**g = exp(g*log_q),
    # so no separate sigmoid / jnp.power evaluations are needed.
    log_p = jax.nn.log_sigmoid(x)       # log(sigmoid(x))
    log_q = jax.nn.log_sigmoid(-x)      # log(1 - sigmoid(x))
    pow_q = jnp.exp(gamma * log_q)      # (1 - p)**gamma
    pow_p = jnp.exp(gamma * log_p)      # p**gamma
    return (-alpha * pow_q * t * log_p
            - (1.0 - alpha) * pow_p * (1.0 - t) * log_q)


def _elem_kernel(x_ref, t_ref, o_ref, *, alpha, gamma):
    x = x_ref[...].astype(jnp.float32)
    t = t_ref[...].astype(jnp.float32)
    o_ref[...] = _focal_terms(x, t, alpha, gamma).astype(o_ref.dtype)


def _partial_sum_kernel(x_ref, t_ref, o_ref, *, alpha, gamma, n, block_rows,
                        needs_mask):
    x = x_ref[...].astype(jnp.float32)
    t = t_ref[...].astype(jnp.float32)
    loss = _focal_terms(x, t, alpha, gamma)
    if needs_mask:
        # Mask the padded tail / ragged last block in-kernel (no extra HBM
        # stream).  n is a static Python int closed over at trace time.
        row_ids = jax.lax.broadcasted_iota(jnp.int32, (block_rows, LANE), 0)
        lane_ids = jax.lax.broadcasted_iota(jnp.int32, (block_rows, LANE), 1)
        elem_ids = (pl.program_id(0) * block_rows + row_ids) * LANE + lane_ids
        loss = jnp.where(elem_ids < n, loss, 0.0)
    # Reduce only along the row-group axis (pure vreg-wise VPU adds); the final
    # tiny reduction of the (num_blocks*8, 128) partials is done in the wrapper,
    # so every grid step is independent and the grid axis stays "parallel".
    o_ref[...] = loss.reshape(block_rows // SUBLANE, SUBLANE, LANE).sum(axis=0)


def binary_focal_loss_with_logits(x, target, alpha=0.25, gamma=2.0,
                                  reduction="none"):
    if x.ndim < 2:
        raise ValueError(f"Invalid input shape, expect BxCx*. Got: {x.shape}")
    if x.shape[0] != target.shape[0]:
        raise ValueError("Batch size of input and target must match.")

    orig_shape = x.shape
    n = int(x.size)

    xf = x.reshape(-1)
    tf = target.reshape(-1)

    # Pad only when n is not already a vreg-tile multiple (common NN shapes
    # need no pad, avoiding an extra full read+write of both tensors).
    n_pad = ((n + _TILE - 1) // _TILE) * _TILE
    if n_pad != n:
        xf = jnp.pad(xf, (0, n_pad - n))
        tf = jnp.pad(tf, (0, n_pad - n))

    rows = n_pad // LANE
    X = xf.reshape(rows, LANE)
    T = tf.reshape(rows, LANE)

    block_rows = rows if rows <= _MAX_BLOCK_ROWS else _MAX_BLOCK_ROWS
    grid = (pl.cdiv(rows, block_rows),)
    in_spec = pl.BlockSpec((block_rows, LANE), lambda i: (i, 0))
    cparams = pltpu.CompilerParams(dimension_semantics=("parallel",),
                                   vmem_limit_bytes=_VMEM_LIMIT)

    if reduction == "none":
        out = pl.pallas_call(
            functools.partial(_elem_kernel, alpha=alpha, gamma=gamma),
            out_shape=jax.ShapeDtypeStruct((rows, LANE), x.dtype),
            grid=grid,
            in_specs=[in_spec, in_spec],
            out_specs=pl.BlockSpec((block_rows, LANE), lambda i: (i, 0)),
            compiler_params=cparams,
        )(X, T)
        return out.reshape(-1)[:n].reshape(orig_shape)

    if reduction not in ("mean", "sum"):
        raise NotImplementedError(f"Invalid reduction mode: {reduction}")

    needs_mask = (n != n_pad) or (rows % block_rows != 0)
    num_blocks = grid[0]
    partials = pl.pallas_call(
        functools.partial(_partial_sum_kernel, alpha=alpha, gamma=gamma,
                          n=n, block_rows=block_rows, needs_mask=needs_mask),
        out_shape=jax.ShapeDtypeStruct((num_blocks * SUBLANE, LANE),
                                       jnp.float32),
        grid=grid,
        in_specs=[in_spec, in_spec],
        out_specs=pl.BlockSpec((SUBLANE, LANE), lambda i: (i, 0)),
        compiler_params=cparams,
    )(X, T)

    total = jnp.sum(partials)
    if reduction == "sum":
        return total.astype(x.dtype)
    return (total / n).astype(x.dtype)


class BinaryFocalLossWithLogits:
    """JAX/Pallas port of kornia's BinaryFocalLossWithLogits (forward only)."""

    def __init__(self, alpha: float, gamma: float = 2.0,
                 reduction: str = "none") -> None:
        self.alpha = alpha
        self.gamma = gamma
        self.reduction = reduction

    def __call__(self, input, target):
        return binary_focal_loss_with_logits(
            input, target, self.alpha, self.gamma, self.reduction)


def _reference(x, t, alpha, gamma, reduction):
    log_p = jax.nn.log_sigmoid(x)
    log_q = jax.nn.log_sigmoid(-x)
    p = jax.nn.sigmoid(x)
    q = jax.nn.sigmoid(-x)
    loss = (-alpha * q**gamma * t * log_p
            - (1.0 - alpha) * p**gamma * (1.0 - t) * log_q)
    if reduction == "mean":
        return jnp.mean(loss)
    if reduction == "sum":
        return jnp.sum(loss)
    return loss


if __name__ == "__main__":
    key = jax.random.PRNGKey(0)
    kx, kt = jax.random.split(key)

    # NCHW-shaped logits / binary targets (op itself is layout-agnostic).
    x = jax.random.normal(kx, (2, 4, 16, 16), dtype=jnp.float32) * 3.0
    target = jax.random.bernoulli(kt, 0.5, (2, 4, 16, 16)).astype(jnp.float32)

    # reduction='none'
    crit_none = BinaryFocalLossWithLogits(alpha=0.25, gamma=2.0,
                                          reduction="none")
    out_none = jax.block_until_ready(crit_none(x, target))
    ref_none = _reference(x, target, 0.25, 2.0, "none")
    assert out_none.shape == x.shape
    assert jnp.allclose(out_none, ref_none, atol=1e-5, rtol=1e-5)

    # reduction='mean'
    crit_mean = BinaryFocalLossWithLogits(alpha=0.25, gamma=2.0,
                                          reduction="mean")
    out_mean = jax.block_until_ready(crit_mean(x, target))
    ref_mean = _reference(x, target, 0.25, 2.0, "mean")
    assert jnp.allclose(out_mean, ref_mean, atol=1e-5, rtol=1e-5)

    # reduction='sum' on a ragged (non multiple-of-1024) shape: exercises the
    # host pad + in-kernel iota masking path.
    xr = jax.random.normal(kx, (2, 3, 7, 5), dtype=jnp.float32) * 2.0
    tr = jax.random.bernoulli(kt, 0.5, (2, 3, 7, 5)).astype(jnp.float32)
    crit_sum = BinaryFocalLossWithLogits(alpha=0.25, gamma=2.0, reduction="sum")
    out_sum = jax.block_until_ready(crit_sum(xr, tr))
    ref_sum = _reference(xr, tr, 0.25, 2.0, "sum")
    assert jnp.allclose(out_sum, ref_sum, atol=1e-4, rtol=1e-5)

    # kornia docstring example: expected mean loss = 21.8725
    x3 = jnp.array([[[6.325]], [[5.26]], [[87.49]]], dtype=jnp.float32)
    t3 = jnp.array([[[1.0]], [[1.0]], [[0.0]]], dtype=jnp.float32)
    out_doc = jax.block_until_ready(crit_mean(x3, t3))
    assert jnp.allclose(out_doc, 21.8725, atol=1e-3)

    print("KERNEL_OK")
</pallas_src>

<mosaic_0001>
module attributes {stable_mosaic.version = 11 : i64} {
  func.func @_elem_kernel(%arg0: i32, %arg1: memref<16x128xf32, #tpu.memory_space<vmem>>, %arg2: memref<16x128xf32, #tpu.memory_space<vmem>>, %arg3: memref<16x128xf32, #tpu.memory_space<vmem>>) attributes {dimension_semantics = [#tpu.dimension_semantics<parallel>], iteration_bounds = array<i64: 1>, scalar_prefetch = 0 : i64, scratch_operands = 0 : i64, tpu.core_type = #tpu.core_type<tc>, window_params = [{transform_indices = @transform_0, window_bounds = array<i64: 16, 128>}, {transform_indices = @transform_1, window_bounds = array<i64: 16, 128>}, {transform_indices = @transform_2, window_bounds = array<i64: 16, 128>}]} {
    %c0 = arith.constant 0 : index
    %c0_0 = arith.constant 0 : index
    %0 = vector.load %arg1[%c0, %c0_0] : memref<16x128xf32, #tpu.memory_space<vmem>>, vector<16x128xf32>
    %c0_1 = arith.constant 0 : index
    %c0_2 = arith.constant 0 : index
    %1 = vector.load %arg2[%c0_1, %c0_2] : memref<16x128xf32, #tpu.memory_space<vmem>>, vector<16x128xf32>
    %cst = arith.constant 0.000000e+00 : f32
    %2 = vector.broadcast %cst : f32 to vector<16x128xf32>
    %3 = arith.subf %2, %0 : vector<16x128xf32>
    %cst_3 = arith.constant 0.000000e+00 : f32
    %4 = vector.broadcast %cst_3 : f32 to vector<16x128xf32>
    %5 = arith.maximumf %3, %4 : vector<16x128xf32>
    %6 = vector.broadcast %cst_3 : f32 to vector<16x128xf32>
    %7 = arith.subf %3, %6 : vector<16x128xf32>
    %8 = arith.cmpf one, %7, %7 : vector<16x128xf32>
    %9 = vector.broadcast %cst_3 : f32 to vector<16x128xf32>
    %10 = arith.addf %3, %9 : vector<16x128xf32>
    %11 = math.absf %7 : vector<16x128xf32>
    %cst_4 = arith.constant 0.000000e+00 : f32
    %12 = vector.broadcast %cst_4 : f32 to vector<16x128xf32>
    %13 = arith.subf %12, %11 : vector<16x128xf32>
    %14 = math.exp %13 : vector<16x128xf32>
    %15 = math.log1p %14 : vector<16x128xf32>
    %16 = arith.addf %5, %15 : vector<16x128xf32>
    %17 = arith.select %8, %10, %16 : vector<16x128xi1>, vector<16x128xf32>
    %cst_5 = arith.constant 0.000000e+00 : f32
    %18 = vector.broadcast %cst_5 : f32 to vector<16x128xf32>
    %19 = arith.subf %18, %17 : vector<16x128xf32>
    %cst_6 = arith.constant 0.000000e+00 : f32
    %20 = vector.broadcast %cst_6 : f32 to vector<16x128xf32>
    %21 = arith.subf %20, %0 : vector<16x128xf32>
    %cst_7 = arith.constant 0.000000e+00 : f32
    %22 = vector.broadcast %cst_7 : f32 to vector<16x128xf32>
    %23 = arith.subf %22, %21 : vector<16x128xf32>
    %cst_8 = arith.constant 0.000000e+00 : f32
    %24 = vector.broadcast %cst_8 : f32 to vector<16x128xf32>
    %25 = arith.maximumf %23, %24 : vector<16x128xf32>
    %26 = vector.broadcast %cst_8 : f32 to vector<16x128xf32>
    %27 = arith.subf %23, %26 : vector<16x128xf32>
    %28 = arith.cmpf one, %27, %27 : vector<16x128xf32>
    %29 = vector.broadcast %cst_8 : f32 to vector<16x128xf32>
    %30 = arith.addf %23, %29 : vector<16x128xf32>
    %31 = math.absf %27 : vector<16x128xf32>
    %cst_9 = arith.constant 0.000000e+00 : f32
    %32 = vector.broadcast %cst_9 : f32 to vector<16x128xf32>
    %33 = arith.subf %32, %31 : vector<16x128xf32>
    %34 = math.exp %33 : vector<16x128xf32>
    %35 = math.log1p %34 : vector<16x128xf32>
    %36 = arith.addf %25, %35 : vector<16x128xf32>
    %37 = arith.select %28, %30, %36 : vector<16x128xi1>, vector<16x128xf32>
    %cst_10 = arith.constant 0.000000e+00 : f32
    %38 = vector.broadcast %cst_10 : f32 to vector<16x128xf32>
    %39 = arith.subf %38, %37 : vector<16x128xf32>
    %cst_11 = arith.constant 2.000000e+00 : f32
    %40 = vector.broadcast %cst_11 : f32 to vector<16x128xf32>
    %41 = arith.mulf %40, %39 : vector<16x128xf32>
    %42 = math.exp %41 : vector<16x128xf32>
    %cst_12 = arith.constant 2.000000e+00 : f32
    %43 = vector.broadcast %cst_12 : f32 to vector<16x128xf32>
    %44 = arith.mulf %43, %19 : vector<16x128xf32>
    %45 = math.exp %44 : vector<16x128xf32>
    %cst_13 = arith.constant -2.500000e-01 : f32
    %46 = vector.broadcast %cst_13 : f32 to vector<16x128xf32>
    %47 = arith.mulf %46, %42 : vector<16x128xf32>
    %48 = arith.mulf %47, %1 : vector<16x128xf32>
    %49 = arith.mulf %48, %19 : vector<16x128xf32>
    %cst_14 = arith.constant 7.500000e-01 : f32
    %50 = vector.broadcast %cst_14 : f32 to vector<16x128xf32>
    %51 = arith.mulf %50, %45 : vector<16x128xf32>
    %cst_15 = arith.constant 1.000000e+00 : f32
    %52 = vector.broadcast %cst_15 : f32 to vector<16x128xf32>
    %53 = arith.subf %52, %1 : vector<16x128xf32>
    %54 = arith.mulf %51, %53 : vector<16x128xf32>
    %55 = arith.mulf %54, %39 : vector<16x128xf32>
    %56 = arith.subf %49, %55 : vector<16x128xf32>
    %c0_16 = arith.constant 0 : index
    %c0_17 = arith.constant 0 : index
    %57 = vector.load %arg3[%c0_16, %c0_17] : memref<16x128xf32, #tpu.memory_space<vmem>>, vector<16x128xf32>
    tpu.vector_store %arg3[%c0_16, %c0_17], %56 {strides = array<i32>} : memref<16x128xf32, #tpu.memory_space<vmem>>, vector<16x128xf32>,
    return
  }
  func.func @transform_0(%arg0: i32) -> (i32, i32) {
    %c0_i32 = arith.constant 0 : i32
    %c0_i32_0 = arith.constant 0 : i32
    return %arg0, %c0_i32 : i32, i32
  }
  func.func @transform_1(%arg0: i32) -> (i32, i32) {
    %c0_i32 = arith.constant 0 : i32
    %c0_i32_0 = arith.constant 0 : i32
    return %arg0, %c0_i32 : i32, i32
  }
  func.func @transform_2(%arg0: i32) -> (i32, i32) {
    %c0_i32 = arith.constant 0 : i32
    %c0_i32_0 = arith.constant 0 : i32
    return %arg0, %c0_i32 : i32, i32
  }
}

</mosaic_0001>

<bundles_post_ra>
// kernel: tpu_custom_call.1
= control target key start
LH: loop header
LB: loop body
LE: loop exit
PB: predicated region body
PF: predicated region fallthrough
CT: control target
= control target key end

     0   :  { %7 = vsyncpa [#allocation3], 0  ;;  %s389_s0 = inlined_call_operand.hbm [shape: f32[16,128], index: 0, kind: input, shape index: {}]   ;;  %s390_s1 = inlined_call_operand.hbm [shape: f32[16,128], index: 1, kind: input, shape index: {}]   ;;  %s391_s2 = inlined_call_operand.hbm [shape: f32[16,128], index: 2, kind: output, shape index: {}]  }
   0x1   :  { %8 = vsyncpa [#allocation6], 0 }
   0x2   :  { %9 = vsyncpa [#allocation4], 0  ;;  %s273_s9 = smov [#allocation2]   ;;  %s201_s13 = scalar_lea.hbm %s389_s0, 256 }
   0x3   :  { %s15_s10 = sshll.u32 %s273_s9, 4  ;;  %p202_p0 = scmp.ne.s32.totalorder %s389_s0, %s201_s13  ;;  %s16_s10 = int_to_ptr.vmem [resolvable:$true] %s15_s10 }
   0x4   :  { %p205_p1 = scmp.lt.u32.totalorder %s201_s13, %s389_s0 }
   0x6   :  { %p207_p2 = pnand %p205_p1, %p202_p0 }
   0x8   :  { %210 = shalt.err (!%p207_p2)
}
   0x9   :  { %s211_s18 = scalar_lea.vmem %s16_s10, 256  ;;  %p216_p4 = scmp.lt.s32.totalorder %s16_s10, %s16_s10 }
   0xa   :  { %p212_p3 = scmp.ne.s32.totalorder %s16_s10, %s211_s18  ;;  %p217_p5 = scmp.lt.s32.totalorder %s211_s18, %s211_s18 }
   0xc   :  { %p218_p6 = por %p217_p5, %p216_p4 }
   0xe   :  { %p219_p7 = pnand %p218_p6, %p212_p3 }
  0x10   :  { %222 = shalt.err (!%p219_p7)
}
  0x11   :  { %s274_s19 = smov 128   ;;  %s275_s20 = smov 8  }
  0x12   :  { %21 = dma.hbm_to_vmem [thread:$0]  %s389_s0, 256, %s16_s10, [#allocation3], %s274_s19, %s274_s19, %s275_s20  }
  0x13   :  { %s276_s23 = smov [#allocation5]   ;;  %s223_s27 = scalar_lea.hbm %s390_s1, 256 }
  0x14   :  { %s27_s24 = sshll.u32 %s276_s23, 4  ;;  %p224_p8 = scmp.ne.s32.totalorder %s390_s1, %s223_s27  ;;  %s28_s24 = int_to_ptr.vmem [resolvable:$true] %s27_s24 }
  0x15   :  { %p227_p9 = scmp.lt.u32.totalorder %s223_s27, %s390_s1 }
  0x17   :  { %p229_p10 = pnand %p227_p9, %p224_p8 }
  0x19   :  { %232 = shalt.err (!%p229_p10)
}
  0x1a   :  { %s233_s4 = scalar_lea.vmem %s28_s24, 256  ;;  %p238_p12 = scmp.lt.s32.totalorder %s28_s24, %s28_s24 }
  0x1b   :  { %p234_p11 = scmp.ne.s32.totalorder %s28_s24, %s233_s4  ;;  %p239_p13 = scmp.lt.s32.totalorder %s233_s4, %s233_s4 }
  0x1d   :  { %p240_p0 = por %p239_p13, %p238_p12 }
  0x1f   :  { %p241_p1 = pnand %p240_p0, %p234_p11 }
  0x21   :  { %244 = shalt.err (!%p241_p1)
}
  0x22   :  { %33 = dma.hbm_to_vmem [thread:$0]  %s390_s1, 256, %s28_s24, [#allocation6], %s274_s19, %s274_s19, %s275_s20  }
  0x23   :  { %267 = dma.done.wait [#allocation3], 256  }
  0x24   :  { %268 = vsyncadd [#allocation3], 4294967040 }
  0x25   :  { %269 = dma.done.wait [#allocation6], 256  }
  0x26   :  { %270 = vsyncadd [#allocation6], 4294967040  ;;  %v40_v0 = vld [vmem:[#allocation2] sm:$0xff]  ;;  %v41_v1 = vld [vmem:[#allocation2 + $0x8] sm:$0xff]  ;;  %s277_s1 = smov [#allocation7]  }
  0x27   :  { %v323_v2 = vsub.f32 0.0, %v40_v0  ;;  %v325_v3 = vsub.f32 0.0, %v41_v1  ;;  %s159_s6 = sshll.u32 %s277_s1, 4  ;;  %s160_s6 = int_to_ptr.vmem [resolvable:$true] %s159_s6 }
  0x28   :  { %s245_s7 = scalar_lea.vmem %s160_s6, 256  ;;  %p250_p3 = scmp.lt.s32.totalorder %s160_s6, %s160_s6 }
  0x29   :  { %v52_v4 = vand.u32 2147483647, %v323_v2  ;;  %v329_v5 = vsub.f32 0.0, %v323_v2  ;;  %v53_v6 = vand.u32 2147483647, %v325_v3  ;;  %v333_v7 = vsub.f32 0.0, %v325_v3  ;;  %p246_p2 = scmp.ne.s32.totalorder %s160_s6, %s245_s7  ;;  %p251_p4 = scmp.lt.s32.totalorder %s245_s7, %s245_s7 }
  0x2a   :  { %v46_v39 = vmax.f32 %v323_v2, 0.0  ;;  %v47_v46 = vmax.f32 %v325_v3, 0.0  ;;  %vm48_vm2 = vcmp.ne.f32.partialorder %v323_v2, %v323_v2  ;;  %vm49_vm4 = vcmp.ne.f32.partialorder %v325_v3, %v325_v3 }
  0x2b   :  { %v54_v8 = vsub.f32 0.0, %v52_v4  ;;  %v92_v9 = vand.u32 2147483647, %v329_v5  ;;  %v55_v10 = vsub.f32 0.0, %v53_v6  ;;  %v93_v11 = vand.u32 2147483647, %v333_v7  ;;  %p252_p5 = por %p251_p4, %p250_p3 }
  0x2c   :  { %v86_v49 = vmax.f32 %v329_v5, 0.0  ;;  %v87_v58 = vmax.f32 %v333_v7, 0.0  ;;  %vm88_vm6 = vcmp.ne.f32.partialorder %v329_v5, %v329_v5  ;;  %vm89_vm7 = vcmp.ne.f32.partialorder %v333_v7, %v333_v7 }
  0x2d   :  { %v56_v12 = vmul.f32 1.442695, %v54_v8  ;;  %v94_v13 = vsub.f32 0.0, %v92_v9  ;;  %v58_v14 = vmul.f32 1.442695, %v55_v10  ;;  %v95_v15 = vsub.f32 0.0, %v93_v11  ;;  %p253_p6 = pnand %p252_p5, %p246_p2 }
  0x2f   :  { %177 = vpow2.f32 %v56_v12  ;;  %v96_v16 = vmul.f32 1.442695, %v94_v13  ;;  %v98_v17 = vmul.f32 1.442695, %v95_v15 }
  0x30   :  { %179 = vpow2.f32 %v58_v14 }
  0x31   :  { %181 = vpow2.f32 %v96_v16 }
  0x32   :  { %183 = vpow2.f32 %v98_v17 }
  0x39   :  { %v178_v18 = vpop.eup %177 }
  0x3a   :  { %v180_v19 = vpop.eup %179  ;;  %v60_v20 = vadd.f32 1.0, %v178_v18  ;;  %v63_v25 = vmul.f32 -0.5, %v178_v18  ;;  %v66_v31 = vand.u32 2147483647, %v178_v18 }
  0x3b   :  { %v182_v21 = vpop.eup %181  ;;  %v69_v22 = vadd.f32 1.0, %v180_v19  ;;  %v72_v26 = vmul.f32 -0.5, %v180_v19  ;;  %v75_v34 = vand.u32 2147483647, %v180_v19 }
  0x3c   :  { %v184_v23 = vpop.eup %183  ;;  %185 = vlog2.f32 %v60_v20  ;;  %v100_v24 = vadd.f32 1.0, %v182_v21  ;;  %v103_v28 = vmul.f32 -0.5, %v182_v21  ;;  %v64_v29 = vadd.f32 1.0, %v63_v25 }
  0x3d   :  { %187 = vlog2.f32 %v69_v22  ;;  %v109_v27 = vadd.f32 1.0, %v184_v23  ;;  %v112_v30 = vmul.f32 -0.5, %v184_v23  ;;  %v73_v32 = vadd.f32 1.0, %v72_v26 }
  0x3e   :  { %189 = vlog2.f32 %v100_v24  ;;  %v104_v33 = vadd.f32 1.0, %v103_v28  ;;  %v106_v35 = vand.u32 2147483647, %v182_v21  ;;  %v65_v36 = vmul.f32 %v178_v18, %v64_v29 }
  0x3f   :  { %191 = vlog2.f32 %v109_v27  ;;  %v113_v37 = vadd.f32 1.0, %v112_v30  ;;  %vm338_vm0 = vcmp.lt.f32.partialorder %v66_v31, 0.0004427343  ;;  %v74_v41 = vmul.f32 %v180_v19, %v73_v32  ;;  %v42_v19 = vld [vmem:[#allocation5] sm:$0xff] }
  0x40   :  { %v115_v42 = vand.u32 2147483647, %v184_v23  ;;  %v105_v45 = vmul.f32 %v182_v21, %v104_v33  ;;  %vm343_vm1 = vcmp.lt.f32.partialorder %v75_v34, 0.0004427343  ;;  %vm350_vm3 = vcmp.lt.f32.partialorder %v106_v35, 0.0004427343 }
  0x41   :  { %v114_v54 = vmul.f32 %v184_v23, %v113_v37  ;;  %v144_v20 = vsub.f32 1.0, %v42_v19 }
  0x42   :  { %vm116_vm5 = vcmp.lt.f32.partialorder %v115_v42, 0.0004427343 }
  0x46   :  { %v186_v38 = vpop.eup %185 }
  0x47   :  { %v188_v43 = vpop.eup %187  ;;  %v62_v44 = vmul.f32 0.6931472, %v186_v38 }
  0x48   :  { %v190_v48 = vpop.eup %189  ;;  %v71_v51 = vmul.f32 0.6931472, %v188_v43 }
  0x49   :  { %v68_v52 = vsel %vm338_vm0, %v65_v36, %v62_v44  ;;  %v102_v53 = vmul.f32 0.6931472, %v190_v48  ;;  %v192_v55 = vpop.eup %191 }
  0x4a   :  { %v78_v56 = vadd.f32 %v68_v52, %v46_v39  ;;  %v77_v57 = vsel %vm343_vm1, %v74_v41, %v71_v51  ;;  %v111_v61 = vmul.f32 0.6931472, %v192_v55 }
  0x4b   :  { %v108_v59 = vsel %vm350_vm3, %v105_v45, %v102_v53  ;;  %v79_v60 = vadd.f32 %v77_v57, %v47_v46 }
  0x4c   :  { %v80_v62 = vsel %vm48_vm2, %v323_v2, %v78_v56  ;;  %v118_v63 = vadd.f32 %v108_v59, %v86_v49  ;;  %v117_v4 = vsel %vm116_vm5, %v114_v54, %v111_v61 }
  0x4d   :  { %v82_v0 = vsub.f32 0.0, %v80_v62  ;;  %v81_v1 = vsel %vm49_vm4, %v325_v3, %v79_v60  ;;  %v119_v9 = vadd.f32 %v117_v4, %v87_v58 }
  0x4e   :  { %v120_v6 = vsel %vm88_vm6, %v329_v5, %v118_v63  ;;  %v83_v8 = vsub.f32 0.0, %v81_v1  ;;  %v43_v5 = vld [vmem:[#allocation5 + $0x8] sm:$0xff] }
  0x4f   :  { %v122_v10 = vsub.f32 0.0, %v120_v6  ;;  %v130_v11 = vmul.f32 2.0, %v82_v0  ;;  %v121_v12 = vsel %vm89_vm7, %v333_v7, %v119_v9  ;;  %v145_v22 = vsub.f32 1.0, %v43_v5 }
  0x50   :  { %v131_v13 = vmul.f32 2.0, %v83_v8  ;;  %v123_v2 = vsub.f32 0.0, %v121_v12 }
  0x51   :  { %v124_v14 = vmul.f32 2.0, %v122_v10  ;;  %v132_v15 = vmul.f32 1.442695, %v130_v11 }
  0x52   :  { %v134_v16 = vmul.f32 1.442695, %v131_v13  ;;  %v125_v3 = vmul.f32 2.0, %v123_v2 }
  0x53   :  { %v126_v17 = vmul.f32 1.442695, %v124_v14  ;;  %193 = vpow2.f32 %v132_v15 }
  0x54   :  { %195 = vpow2.f32 %v134_v16  ;;  %v128_v18 = vmul.f32 1.442695, %v125_v3 }
  0x55   :  { %197 = vpow2.f32 %v126_v17 }
  0x56   :  { %199 = vpow2.f32 %v128_v18 }
  0x5d   :  { %v194_v21 = vpop.eup %193 }
  0x5e   :  { %v196_v23 = vpop.eup %195  ;;  %v142_v24 = vmul.f32 0.75, %v194_v21 }
  0x5f   :  { %v198_v7 = vpop.eup %197  ;;  %v143_v25 = vmul.f32 0.75, %v196_v23 }
  0x60   :  { %v136_v26 = vmul.f32 -0.25, %v198_v7  ;;  %v146_v27 = vmul.f32 %v144_v20, %v142_v24  ;;  %v200_v28 = vpop.eup %199 }
  0x61   :  { %v147_v29 = vmul.f32 %v145_v22, %v143_v25  ;;  %v137_v32 = vmul.f32 -0.25, %v200_v28 }
  0x62   :  { %v138_v30 = vmul.f32 %v136_v26, %v42_v19  ;;  %v148_v31 = vmul.f32 %v146_v27, %v122_v10 }
  0x63   :  { %v139_v34 = vmul.f32 %v137_v32, %v43_v5  ;;  %v149_v35 = vmul.f32 %v147_v29, %v123_v2 }
  0x64   :  { %v140_v33 = vmul.f32 %v138_v30, %v82_v0 }
  0x65   :  { %v141_v37 = vmul.f32 %v139_v34, %v83_v8 }
  0x66   :  { %v150_v36 = vsub.f32 %v140_v33, %v148_v31 }
  0x67   :  { %v151_v38 = vsub.f32 %v141_v37, %v149_v35 }
  0x68   :  { %152 = vst [vmem:[#allocation7] sm:$0xff] %v150_v36 }
  0x69   :  { %153 = vst [vmem:[#allocation7 + $0x8] sm:$0xff] %v151_v38 }
  0x6a   :  { %256 = shalt.err (!%p253_p6)
}
  0x6b   :  { %s257_s10 = scalar_lea.hbm %s391_s2, 256 }
  0x6c   :  { %p258_p7 = scmp.ne.s32.totalorder %s391_s2, %s257_s10  ;;  %p261_p8 = scmp.lt.u32.totalorder %s257_s10, %s391_s2 }
  0x6e   :  { %p263_p9 = pnand %p261_p8, %p258_p7 }
  0x70   :  { %266 = shalt.err (!%p263_p9)
}
  0x71   :  { %165 = dma.vmem_to_hbm [thread:$0]  %s160_s6, 256, %s391_s2, [#allocation4], %s274_s19, %s274_s19, %s275_s20  }
  0x72   :  { %271 = dma.done.wait [#allocation4], 256  }
  0x73   :  { %272 = vsyncadd [#allocation4], 4294967040 }
  0x74   :  { %169 = vsyncpa [#allocation3], 1 }
  0x75   :  { %170 = vsyncpa [#allocation6], 1 }
  0x76   :  { %171 = vsyncpa [#allocation4], 1 }

</bundles_post_ra>
